<compile_context>
chip_gen: v5e
topology: v5e:2x2
jax: 0.10.0
libtpu: 0.0.40
codegen_flags: <defaults>
</compile_context>

<pallas_src>
import functools
import math

import jax
import jax.numpy as jnp
from jax.experimental import pallas as pl
from jax.experimental.pallas import tpu as pltpu

_ROW_GRANULE = 16  # packed-row sublane granule, safe for bf16 and f32 blocks


def _cdiv(a, b):
    return (a + b - 1) // b


def _round_up(x, m):
    return ((x + m - 1) // m) * m


def _block_diag(w, p):
    """(d, e) -> (p*d, p*e) with `w` repeated on the diagonal (exact zeros off it)."""
    if p == 1:
        return w
    d, e = w.shape
    out = jnp.zeros((p * d, p * e), w.dtype)
    for i in range(p):
        out = out.at[i * d:(i + 1) * d, i * e:(i + 1) * e].set(w)
    return out


def _payload_kernel(x_ref, pe_ref, w12_ref, w3_ref, b3_ref, o_ref):
    """One row tile of the fully folded payload MLP.

    rt = packed-row tile, P = rows packed along the lane axis (P*H == 128).
      x_ref   (rt, P*D)    bf16  P entity-embedding rows packed along lanes
      pe_ref  (rt, P*Dh)   bf16  [pe_s|pe_e] @ w2 + b1 @ w2s + b2, packed like x
      w12_ref (P*D, P*Dh)  bf16  block-diag(w1 @ (w2[:H] + w2[H:]))
      w3_ref  (P*Dh, P*H)  bf16  block-diag(w3)
      b3_ref  (1, P*H)     f32   tile(b3, P)
      o_ref   (rt, P*H)    f32   lane-dense output
    """
    h = jnp.dot(x_ref[...], w12_ref[...], preferred_element_type=jnp.float32)
    h = jnp.maximum(h + pe_ref[...].astype(jnp.float32), 0.0)
    out = jnp.dot(h.astype(jnp.bfloat16), w3_ref[...],
                  preferred_element_type=jnp.float32)
    o_ref[...] = (out + b3_ref[...]).astype(o_ref.dtype)


def embedding_payload_pallas(x, pe_term, w12, w3, b3, *, row_tile=4096):
    """Lane-packed, bf16-streamed payload MLP.

    x:       (N, D)  fused entity embeddings (concat of sources)
    pe_term: (N, Dh) [pe_s|pe_e] @ w2 + b1 @ w2s + b2
    w12:     (D, Dh) = w1 @ (w2[:H] + w2[H:]);  w3: (Dh, H);  b3: (1, H)
    returns  (N, H) float32
    """
    N, D = x.shape
    Dh = w12.shape[1]
    H = w3.shape[1]

    # Pack P rows along the lane axis so every streamed block (crucially the
    # H=32-wide output) is 128-lane dense.  Exact: the weights go block-diagonal.
    P = 128 // H if (H <= 128 and 128 % H == 0) else 1

    # Balanced tiles: g near-equal tiles instead of fixed-tile + ragged tail;
    # force g >= 2 when there is enough work so both v7x TensorCores get rows.
    n_prows_raw = _cdiv(N, P)
    g = _cdiv(n_prows_raw, row_tile)
    if n_prows_raw >= 2 * _ROW_GRANULE:
        g = max(g, 2)
    rt = _round_up(_cdiv(n_prows_raw, g), _ROW_GRANULE)
    n_prows = rt * g
    n_rows = n_prows * P

    def pad_rows(a):
        n = a.shape[0]
        return a if n == n_rows else jnp.pad(a, ((0, n_rows - n), (0, 0)))

    # Row streams: bf16, lane-packed (row-major reshapes are free; the cast and
    # the upstream concat fuse into a single producer pass).
    x_p = pad_rows(x).astype(jnp.bfloat16).reshape(n_prows, P * D)
    pe_p = pad_rows(pe_term).astype(jnp.bfloat16).reshape(n_prows, P * Dh)

    # Resident weights: bf16 block-diagonal (DMA'd once, constant index_map).
    w12_p = _block_diag(w12, P).astype(jnp.bfloat16)          # (P*D, P*Dh)
    w3_p = _block_diag(w3, P).astype(jnp.bfloat16)            # (P*Dh, P*H)
    b3_p = jnp.tile(b3.astype(jnp.float32), (1, P))           # (1, P*H)

    def row_spec(width):
        return pl.BlockSpec((rt, width), lambda i: (i, 0))

    def full_spec(shape):
        return pl.BlockSpec(shape, lambda i: (0, 0))

    out = pl.pallas_call(
        _payload_kernel,
        out_shape=jax.ShapeDtypeStruct((n_prows, P * H), jnp.float32),
        grid_spec=pltpu.PrefetchScalarGridSpec(
            num_scalar_prefetch=0,
            grid=(g,),
            in_specs=[row_spec(P * D), row_spec(P * Dh),
                      full_spec(w12_p.shape), full_spec(w3_p.shape),
                      full_spec(b3_p.shape)],
            out_specs=row_spec(P * H),
        ),
        compiler_params=pltpu.CompilerParams(
            dimension_semantics=("parallel",),
            # 48 MiB leaves headroom on v7x's 64 MiB VMEM; v5e/v6e (128 MiB)
            # can raise this together with row_tile (8192-16384 packed rows).
            vmem_limit_bytes=48 * 1024 * 1024),
    )(x_p, pe_p, w12_p, w3_p, b3_p)

    # Unpack lanes back to rows (free row-major reshape) and drop padding.
    return out.reshape(n_rows, H)[:N]


def make_sinusoidal_pe(max_len, hidden_dim):
    """PositionalEncoding buffer: pe[pos, 0::2]=sin, pe[pos, 1::2]=cos."""
    position = jnp.arange(max_len, dtype=jnp.float32)[:, None]
    div_term = jnp.exp(jnp.arange(0, hidden_dim, 2, dtype=jnp.float32)
                       * (-math.log(10000.0) / hidden_dim))
    pe = jnp.zeros((max_len, hidden_dim), dtype=jnp.float32)
    pe = pe.at[:, 0::2].set(jnp.sin(position * div_term))
    pe = pe.at[:, 1::2].set(jnp.cos(position * div_term))
    return pe


def init_params(key, total_dim, hidden_size):
    """Deterministic synthetic parameters (shapes follow the module __init__)."""
    k1, k2, k3, k4, k5, k6 = jax.random.split(key, 6)
    s = 0.05
    return {
        # project_embedding: Linear(total_dim, H)
        "w1": s * jax.random.normal(k1, (total_dim, hidden_size), jnp.float32),
        "b1": s * jax.random.normal(k2, (1, hidden_size), jnp.float32),
        # alias_position_cat layer 1: Linear(2H, total_dim)
        "w2": s * jax.random.normal(k3, (2 * hidden_size, total_dim), jnp.float32),
        "b2": s * jax.random.normal(k4, (1, total_dim), jnp.float32),
        # alias_position_cat layer 2: Linear(total_dim, H)
        "w3": s * jax.random.normal(k5, (total_dim, hidden_size), jnp.float32),
        "b3": s * jax.random.normal(k6, (1, hidden_size), jnp.float32),
    }


@functools.partial(jax.jit, static_argnames=("hidden_size", "row_tile"))
def embedding_payload_forward(start_span_idx, end_span_idx, emb_list, params,
                              pe_table, hidden_size, row_tile=4096):
    """Full forward: exact weight folding / PE gather in JAX, hot path in Pallas."""
    emb_list = [e for e in emb_list if e is not None]
    B, M, K, _ = emb_list[0].shape
    H = hidden_size
    N = B * M * K

    # --- exact algebraic folds, done once in f32 outside the hot loop ---
    #   cat([e + pe_s, e + pe_e]) @ w2 + b2
    # = e @ (w2a + w2b) + [pe_s|pe_e] @ w2 + b2                 (split the concat)
    # = x @ (w1 @ w2s) + ([pe_s|pe_e] @ w2 + b1 @ w2s + b2)     (fold project_embedding)
    w2 = params["w2"]
    w2s = w2[:H, :] + w2[H:, :]                                 # (H, Dh)
    w12 = params["w1"] @ w2s                                    # (D, Dh)
    b2f = params["b1"] @ w2s + params["b2"]                     # (1, Dh)

    # Positional-encoding term: one small matmul per (B, M) alias (K-times
    # cheaper than per candidate row), bias folded, then broadcast over K.
    pe_s = jnp.take(pe_table, start_span_idx, axis=0)           # (B, M, H)
    pe_e = jnp.take(pe_table, end_span_idx, axis=0)             # (B, M, H)
    pe_cat = jnp.concatenate([pe_s, pe_e], axis=-1).reshape(B * M, 2 * H)
    pe_term = pe_cat @ w2 + b2f                                 # (B*M, Dh) f32
    Dh = pe_term.shape[-1]
    pe_term = jnp.broadcast_to(pe_term[:, None, :], (B * M, K, Dh)).reshape(N, Dh)
    # TODO(synk): v5e could stream pe_term at (B*M) granularity and repeat over
    # K in-kernel (sublane repeat); kept wrapper-side to avoid relayout risk.

    # Single fused entity-embedding operand; the concat fuses with the bf16
    # cast inside embedding_payload_pallas into one producer pass.
    x = jnp.concatenate([e.reshape(N, e.shape[-1]) for e in emb_list], axis=-1)

    out = embedding_payload_pallas(x, pe_term, w12, params["w3"], params["b3"],
                                   row_tile=row_tile)
    return out.reshape(B, M, K, H)


def reference_forward(start_span_idx, end_span_idx, emb_list, params, pe_table):
    """Pure-JAX reference (exact module math) for the correctness check."""
    B, M, K, _ = emb_list[0].shape
    x = jnp.concatenate(emb_list, axis=-1)
    e = x @ params["w1"] + params["b1"][0]
    pe_s = pe_table[jnp.broadcast_to(start_span_idx[:, :, None], (B, M, K))]
    pe_e = pe_table[jnp.broadcast_to(end_span_idx[:, :, None], (B, M, K))]
    cat = jnp.concatenate([e + pe_s, e + pe_e], axis=-1)
    h = jnp.maximum(cat @ params["w2"] + params["b2"][0], 0.0)
    return h @ params["w3"] + params["b3"][0]


if __name__ == "__main__":
    # Small synthetic shapes consistent with the module:
    #   B=2 sentences, M=2 aliases per sentence, K=4 candidates per alias,
    #   two entity-embedding sources of dims 24 and 40 -> total_dim=64, H=32.
    B, M, K = 2, 2, 4
    emb_dims = (24, 40)
    total_dim = sum(emb_dims)
    hidden_size = 32
    max_sent_len = 64

    key = jax.random.PRNGKey(0)
    k_emb1, k_emb2, k_start, k_len, k_params = jax.random.split(key, 5)

    emb1 = jax.random.normal(k_emb1, (B, M, K, emb_dims[0]), jnp.float32)
    emb2 = jax.random.normal(k_emb2, (B, M, K, emb_dims[1]), jnp.float32)
    start_span_idx = jax.random.randint(k_start, (B, M), 0, max_sent_len - 8)
    end_span_idx = start_span_idx + jax.random.randint(k_len, (B, M), 1, 8)

    pe_table = make_sinusoidal_pe(max_sent_len, hidden_size)
    params = init_params(k_params, total_dim, hidden_size)

    out = embedding_payload_forward(start_span_idx, end_span_idx,
                                    (emb1, emb2), params, pe_table,
                                    hidden_size=hidden_size)
    out = jax.block_until_ready(out)

    ref = reference_forward(start_span_idx, end_span_idx, (emb1, emb2),
                            params, pe_table)
    assert out.shape == (B, M, K, hidden_size)
    # bf16 streaming of x / weights / PE term gives ~1e-3-level deviations.
    assert jnp.allclose(out, ref, atol=2e-2, rtol=2e-2)
    print("KERNEL_OK")
</pallas_src>

<mosaic_0001>
module attributes {stable_mosaic.version = 11 : i64} {
  func.func @_payload_kernel(%arg0: i32, %arg1: memref<16x256xbf16, #tpu.memory_space<vmem>>, %arg2: memref<16x256xbf16, #tpu.memory_space<vmem>>, %arg3: memref<256x256xbf16, #tpu.memory_space<vmem>>, %arg4: memref<256x128xbf16, #tpu.memory_space<vmem>>, %arg5: memref<1x128xf32, #tpu.memory_space<vmem>>, %arg6: memref<16x128xf32, #tpu.memory_space<vmem>>) attributes {dimension_semantics = [#tpu.dimension_semantics<parallel>], iteration_bounds = array<i64: 1>, scalar_prefetch = 0 : i64, scratch_operands = 0 : i64, tpu.core_type = #tpu.core_type<tc>, window_params = [{transform_indices = @transform_0, window_bounds = array<i64: 16, 256>}, {transform_indices = @transform_1, window_bounds = array<i64: 16, 256>}, {pipeline_mode = #tpu.pipeline_mode<synchronous>, transform_indices = @transform_2, window_bounds = array<i64: 256, 256>}, {pipeline_mode = #tpu.pipeline_mode<synchronous>, transform_indices = @transform_3, window_bounds = array<i64: 256, 128>}, {pipeline_mode = #tpu.pipeline_mode<synchronous>, transform_indices = @transform_4, window_bounds = array<i64: 1, 128>}, {transform_indices = @transform_5, window_bounds = array<i64: 16, 128>}]} {
    %c0 = arith.constant 0 : index
    %c0_0 = arith.constant 0 : index
    %0 = vector.load %arg1[%c0, %c0_0] : memref<16x256xbf16, #tpu.memory_space<vmem>>, vector<16x256xbf16>
    %c0_1 = arith.constant 0 : index
    %c0_2 = arith.constant 0 : index
    %1 = vector.load %arg3[%c0_1, %c0_2] : memref<256x256xbf16, #tpu.memory_space<vmem>>, vector<256x256xbf16>
    %cst = arith.constant dense<0.000000e+00> : vector<16x256xf32>
    %2 = tpu.matmul %0, %1, %cst {dimension_numbers = #tpu.dot_dimension_numbers<[1], [0], [0], [1], [0, 0, 1, 1], [], []>} : vector<16x256xbf16>, vector<256x256xbf16>, vector<16x256xf32> -> vector<16x256xf32>
    %c0_3 = arith.constant 0 : index
    %c0_4 = arith.constant 0 : index
    %3 = vector.load %arg2[%c0_3, %c0_4] : memref<16x256xbf16, #tpu.memory_space<vmem>>, vector<16x256xbf16>
    %4 = arith.extf %3 : vector<16x256xbf16> to vector<16x256xf32>
    %5 = arith.addf %2, %4 : vector<16x256xf32>
    %cst_5 = arith.constant 0.000000e+00 : f32
    %6 = vector.broadcast %cst_5 : f32 to vector<16x256xf32>
    %7 = arith.maximumf %5, %6 : vector<16x256xf32>
    %8 = arith.truncf %7 : vector<16x256xf32> to vector<16x256xbf16>
    %c0_6 = arith.constant 0 : index
    %c0_7 = arith.constant 0 : index
    %9 = vector.load %arg4[%c0_6, %c0_7] : memref<256x128xbf16, #tpu.memory_space<vmem>>, vector<256x128xbf16>
    %cst_8 = arith.constant dense<0.000000e+00> : vector<16x128xf32>
    %10 = tpu.matmul %8, %9, %cst_8 {dimension_numbers = #tpu.dot_dimension_numbers<[1], [0], [0], [1], [0, 0, 1, 1], [], []>} : vector<16x256xbf16>, vector<256x128xbf16>, vector<16x128xf32> -> vector<16x128xf32>
    %c0_9 = arith.constant 0 : index
    %c0_10 = arith.constant 0 : index
    %11 = vector.load %arg5[%c0_9, %c0_10] : memref<1x128xf32, #tpu.memory_space<vmem>>, vector<1x128xf32>
    %12 = vector.broadcast %11 : vector<1x128xf32> to vector<16x128xf32>
    %13 = arith.addf %10, %12 : vector<16x128xf32>
    %c0_11 = arith.constant 0 : index
    %c0_12 = arith.constant 0 : index
    %14 = vector.load %arg6[%c0_11, %c0_12] : memref<16x128xf32, #tpu.memory_space<vmem>>, vector<16x128xf32>
    tpu.vector_store %arg6[%c0_11, %c0_12], %13 {strides = array<i32>} : memref<16x128xf32, #tpu.memory_space<vmem>>, vector<16x128xf32>,
    return
  }
  func.func @transform_0(%arg0: i32) -> (i32, i32) {
    %c0_i32 = arith.constant 0 : i32
    %c0_i32_0 = arith.constant 0 : i32
    return %arg0, %c0_i32 : i32, i32
  }
  func.func @transform_1(%arg0: i32) -> (i32, i32) {
    %c0_i32 = arith.constant 0 : i32
    %c0_i32_0 = arith.constant 0 : i32
    return %arg0, %c0_i32 : i32, i32
  }
  func.func @transform_2(%arg0: i32) -> (i32, i32) {
    %c0_i32 = arith.constant 0 : i32
    %c0_i32_0 = arith.constant 0 : i32
    %c0_i32_1 = arith.constant 0 : i32
    return %c0_i32, %c0_i32_0 : i32, i32
  }
  func.func @transform_3(%arg0: i32) -> (i32, i32) {
    %c0_i32 = arith.constant 0 : i32
    %c0_i32_0 = arith.constant 0 : i32
    %c0_i32_1 = arith.constant 0 : i32
    return %c0_i32, %c0_i32_0 : i32, i32
  }
  func.func @transform_4(%arg0: i32) -> (i32, i32) {
    %c0_i32 = arith.constant 0 : i32
    %c0_i32_0 = arith.constant 0 : i32
    %c0_i32_1 = arith.constant 0 : i32
    return %c0_i32, %c0_i32_0 : i32, i32
  }
  func.func @transform_5(%arg0: i32) -> (i32, i32) {
    %c0_i32 = arith.constant 0 : i32
    %c0_i32_0 = arith.constant 0 : i32
    return %arg0, %c0_i32 : i32, i32
  }
}

</mosaic_0001>

<bundles_post_ra>
// kernel: embedding_payload_forward.1
= control target key start
LH: loop header
LB: loop body
LE: loop exit
PB: predicated region body
PF: predicated region fallthrough
CT: control target
= control target key end

     0   :  { %s1006_s2 = inlined_call_operand.vmem [shape: bf16[256,256], index: 2, kind: input, shape index: {}]   ;;  %s1007_s0 = inlined_call_operand.vmem [shape: bf16[16,256], index: 0, kind: input, shape index: {}]   ;;  %s1008_s3 = inlined_call_operand.vmem [shape: bf16[256,128], index: 3, kind: input, shape index: {}]   ;;  %s1009_s4 = inlined_call_operand.vmem [shape: f32[1,128], index: 4, kind: input, shape index: {}]   ;;  %s1010_s1 = inlined_call_operand.vmem [shape: bf16[16,256], index: 1, kind: input, shape index: {}]   ;;  %s1011_s5 = inlined_call_operand.vmem [shape: f32[16,128], index: 5, kind: output, shape index: {}]  }
   0x1   :  { %v524_v0 = vld [vmem:[%s1006_s2 + $0x70] sm:$0xf]  ;;  %v675_v1 = vld [vmem:[%s1006_s2 + $0x74] sm:$0xf0]  ;;  %v674_v5 = vld [vmem:[%s1006_s2 + $0x74] sm:$0xf] }
   0x2   :  { %v588_v2 = vld [vmem:[%s1006_s2 + $0xf0] sm:$0xf]  ;;  %v525_v3 = vor.u32 %v675_v1, %v524_v0  ;;  %v691_v4 = vld [vmem:[%s1006_s2 + $0xf4] sm:$0xf0]  ;;  %v526_v6 = vld [vmem:[%s1006_s2 + $0x78] sm:$0xf0] }
   0x3   :  { %v589_v7 = vor.u32 %v691_v4, %v588_v2  ;;  %v529_v8 = vor.u32 %v674_v5, %v526_v6  ;;  %v690_v9 = vld [vmem:[%s1006_s2 + $0xf4] sm:$0xf]  ;;  %v590_v10 = vld [vmem:[%s1006_s2 + $0xf8] sm:$0xf0]  ;;  %v516_v11 = vld [vmem:[%s1006_s2 + $0x60] sm:$0xf] }
   0x4   :  { %230 = vmatpush.bf16.msra.mxu0 %v525_v3  ;;  %v593_v12 = vor.u32 %v690_v9, %v590_v10  ;;  %v673_v13 = vld [vmem:[%s1006_s2 + $0x64] sm:$0xf0]  ;;  %v580_v14 = vld [vmem:[%s1006_s2 + $0xe0] sm:$0xf]  ;;  %v672_v18 = vld [vmem:[%s1006_s2 + $0x64] sm:$0xf] }
   0x5   :  { %v689_v15 = vld [vmem:[%s1006_s2 + $0xe4] sm:$0xf0]  ;;  %244 = vmatpush.bf16.msra.mxu1 %v589_v7  ;;  %258 = vmatpush.bf16.msra.mxu2 %v529_v8  ;;  %v517_v16 = vor.u32 %v673_v13, %v516_v11  ;;  %v518_v19 = vld [vmem:[%s1006_s2 + $0x68] sm:$0xf0]  ;;  %v688_v20 = vld [vmem:[%s1006_s2 + $0xe4] sm:$0xf] }
   0x6   :  { %v581_v17 = vor.u32 %v689_v15, %v580_v14  ;;  %272 = vmatpush.bf16.msra.mxu3 %v593_v12  ;;  %v521_v21 = vor.u32 %v672_v18, %v518_v19  ;;  %v582_v22 = vld [vmem:[%s1006_s2 + $0xe8] sm:$0xf0]  ;;  %v508_v23 = vld [vmem:[%s1006_s2 + $0x50] sm:$0xf]  ;;  %v671_v24 = vld [vmem:[%s1006_s2 + $0x54] sm:$0xf0] }
   0x7   :  { %v585_v25 = vor.u32 %v688_v20, %v582_v22  ;;  %v572_v26 = vld [vmem:[%s1006_s2 + $0xd0] sm:$0xf]  ;;  %v687_v27 = vld [vmem:[%s1006_s2 + $0xd4] sm:$0xf0]  ;;  %v670_v28 = vld [vmem:[%s1006_s2 + $0x54] sm:$0xf]  ;;  %v509_v29 = vor.u32 %v671_v24, %v508_v23 }
   0x8   :  { %231 = vmatpush.bf16.msra.mxu0 %v517_v16  ;;  %v510_v30 = vld [vmem:[%s1006_s2 + $0x58] sm:$0xf0]  ;;  %v686_v31 = vld [vmem:[%s1006_s2 + $0xd4] sm:$0xf]  ;;  %v573_v33 = vor.u32 %v687_v27, %v572_v26  ;;  %v500_v35 = vld [vmem:[%s1006_s2 + $0x40] sm:$0xf] }
   0x9   :  { %v574_v32 = vld [vmem:[%s1006_s2 + $0xd8] sm:$0xf0]  ;;  %245 = vmatpush.bf16.msra.mxu1 %v581_v17  ;;  %259 = vmatpush.bf16.msra.mxu2 %v521_v21  ;;  %v513_v34 = vor.u32 %v670_v28, %v510_v30  ;;  %v669_v36 = vld [vmem:[%s1006_s2 + $0x44] sm:$0xf0]  ;;  %v564_v37 = vld [vmem:[%s1006_s2 + $0xc0] sm:$0xf] }
   0xa   :  { %273 = vmatpush.bf16.msra.mxu3 %v585_v25  ;;  %v577_v38 = vor.u32 %v686_v31, %v574_v32  ;;  %v685_v39 = vld [vmem:[%s1006_s2 + $0xc4] sm:$0xf0]  ;;  %v668_v40 = vld [vmem:[%s1006_s2 + $0x44] sm:$0xf]  ;;  %v502_v41 = vld [vmem:[%s1006_s2 + $0x48] sm:$0xf0]  ;;  %v501_v44 = vor.u32 %v669_v36, %v500_v35 }
   0xb   :  { %v684_v42 = vld [vmem:[%s1006_s2 + $0xc4] sm:$0xf]  ;;  %v566_v43 = vld [vmem:[%s1006_s2 + $0xc8] sm:$0xf0]  ;;  %v565_v45 = vor.u32 %v685_v39, %v564_v37  ;;  %v505_v46 = vor.u32 %v668_v40, %v502_v41  ;;  %v492_v47 = vld [vmem:[%s1006_s2 + $0x30] sm:$0xf] }
   0xc   :  { %232 = vmatpush.bf16.msra.mxu0 %v509_v29  ;;  %v667_v48 = vld [vmem:[%s1006_s2 + $0x34] sm:$0xf0]  ;;  %v556_v49 = vld [vmem:[%s1006_s2 + $0xb0] sm:$0xf]  ;;  %v569_v50 = vor.u32 %v684_v42, %v566_v43  ;;  %v666_v52 = vld [vmem:[%s1006_s2 + $0x34] sm:$0xf] }
   0xd   :  { %246 = vmatpush.bf16.msra.mxu1 %v573_v33  ;;  %260 = vmatpush.bf16.msra.mxu2 %v513_v34  ;;  %v683_v51 = vld [vmem:[%s1006_s2 + $0xb4] sm:$0xf0]  ;;  %v494_v53 = vld [vmem:[%s1006_s2 + $0x38] sm:$0xf0]  ;;  %v682_v54 = vld [vmem:[%s1006_s2 + $0xb4] sm:$0xf]  ;;  %v493_v56 = vor.u32 %v667_v48, %v492_v47 }
   0xe   :  { %274 = vmatpush.bf16.msra.mxu3 %v577_v38  ;;  %v558_v55 = vld [vmem:[%s1006_s2 + $0xb8] sm:$0xf0]  ;;  %v557_v57 = vor.u32 %v683_v51, %v556_v49  ;;  %v497_v58 = vor.u32 %v666_v52, %v494_v53  ;;  %v484_v59 = vld [vmem:[%s1006_s2 + $0x20] sm:$0xf]  ;;  %v665_v60 = vld [vmem:[%s1006_s2 + $0x24] sm:$0xf0] }
   0xf   :  { %v548_v61 = vld [vmem:[%s1006_s2 + $0xa0] sm:$0xf]  ;;  %v561_v62 = vor.u32 %v682_v54, %v558_v55  ;;  %v681_v63 = vld [vmem:[%s1006_s2 + $0xa4] sm:$0xf0]  ;;  %v664_v0 = vld [vmem:[%s1006_s2 + $0x24] sm:$0xf]  ;;  %v485_v4 = vor.u32 %v665_v60, %v484_v59 }
  0x10   :  { %233 = vmatpush.bf16.msra.mxu0 %v501_v44  ;;  %v486_v1 = vld [vmem:[%s1006_s2 + $0x28] sm:$0xf0]  ;;  %v680_v2 = vld [vmem:[%s1006_s2 + $0xa4] sm:$0xf]  ;;  %v549_v5 = vor.u32 %v681_v63, %v548_v61  ;;  %v476_v7 = vld [vmem:[%s1006_s2 + $0x10] sm:$0xf] }
  0x11   :  { %247 = vmatpush.bf16.msra.mxu1 %v565_v45  ;;  %261 = vmatpush.bf16.msra.mxu2 %v505_v46  ;;  %v550_v3 = vld [vmem:[%s1006_s2 + $0xa8] sm:$0xf0]  ;;  %v489_v6 = vor.u32 %v664_v0, %v486_v1  ;;  %v663_v8 = vld [vmem:[%s1006_s2 + $0x14] sm:$0xf0]  ;;  %v540_v9 = vld [vmem:[%s1006_s2 + $0x90] sm:$0xf] }
  0x12   :  { %275 = vmatpush.bf16.msra.mxu3 %v569_v50  ;;  %v553_v10 = vor.u32 %v680_v2, %v550_v3  ;;  %v679_v11 = vld [vmem:[%s1006_s2 + $0x94] sm:$0xf0]  ;;  %v662_v12 = vld [vmem:[%s1006_s2 + $0x14] sm:$0xf]  ;;  %v478_v13 = vld [vmem:[%s1006_s2 + $0x18] sm:$0xf0]  ;;  %v477_v16 = vor.u32 %v663_v8, %v476_v7 }
  0x13   :  { %v678_v14 = vld [vmem:[%s1006_s2 + $0x94] sm:$0xf]  ;;  %v542_v15 = vld [vmem:[%s1006_s2 + $0x98] sm:$0xf0]  ;;  %v541_v17 = vor.u32 %v679_v11, %v540_v9  ;;  %v481_v18 = vor.u32 %v662_v12, %v478_v13  ;;  %v468_v19 = vld [vmem:[%s1006_s2] sm:$0xf] }
  0x14   :  { %234 = vmatpush.bf16.msra.mxu0 %v493_v56  ;;  %v661_v20 = vld [vmem:[%s1006_s2 + $0x4] sm:$0xf0]  ;;  %v532_v21 = vld [vmem:[%s1006_s2 + $0x80] sm:$0xf]  ;;  %v545_v22 = vor.u32 %v678_v14, %v542_v15  ;;  %v660_v24 = vld [vmem:[%s1006_s2 + $0x4] sm:$0xf] }
  0x15   :  { %248 = vmatpush.bf16.msra.mxu1 %v557_v57  ;;  %262 = vmatpush.bf16.msra.mxu2 %v497_v58  ;;  %v677_v23 = vld [vmem:[%s1006_s2 + $0x84] sm:$0xf0]  ;;  %v470_v25 = vld [vmem:[%s1006_s2 + $0x8] sm:$0xf0]  ;;  %v676_v26 = vld [vmem:[%s1006_s2 + $0x84] sm:$0xf]  ;;  %v469_v28 = vor.u32 %v661_v20, %v468_v19 }
  0x16   :  { %276 = vmatpush.bf16.msra.mxu3 %v561_v62  ;;  %v534_v27 = vld [vmem:[%s1006_s2 + $0x88] sm:$0xf0]  ;;  %v460_v29 = vld [vmem:[%s1007_s0] sm:$0xf]  ;;  %v659_v30 = vld [vmem:[%s1007_s0 + $0x4] sm:$0xf0]  ;;  %v533_v31 = vor.u32 %v677_v23, %v532_v21  ;;  %v473_v32 = vor.u32 %v660_v24, %v470_v25 }
  0x17   :  { %v658_v33 = vld [vmem:[%s1007_s0 + $0x4] sm:$0xf]  ;;  %v462_v34 = vld [vmem:[%s1007_s0 + $0x8] sm:$0xf0]  ;;  %v537_v35 = vor.u32 %v676_v26, %v534_v27  ;;  %v699_v36 = vld [vmem:[%s1008_s3 + $0x38] sm:$0xff]  ;;  %v461_v37 = vor.u32 %v659_v30, %v460_v29 }
  0x18   :  { %235 = vmatpush.bf16.msra.mxu0 %v485_v4  ;;  %v707_v38 = vld [vmem:[%s1008_s3 + $0x78] sm:$0xff]  ;;  %v465_v39 = vor.u32 %v658_v33, %v462_v34  ;;  %v698_v40 = vld [vmem:[%s1008_s3 + $0x30] sm:$0xff]  ;;  %v697_v42 = vld [vmem:[%s1008_s3 + $0x28] sm:$0xff] }
  0x19   :  { %249 = vmatpush.bf16.msra.mxu1 %v549_v5  ;;  %263 = vmatpush.bf16.msra.mxu2 %v489_v6  ;;  %v706_v41 = vld [vmem:[%s1008_s3 + $0x70] sm:$0xff]  ;;  %v696_v43 = vld [vmem:[%s1008_s3 + $0x20] sm:$0xff]  ;;  %v705_v44 = vld [vmem:[%s1008_s3 + $0x68] sm:$0xff] }
  0x1a   :  { %277 = vmatpush.bf16.msra.mxu3 %v553_v10  ;;  %v695_v45 = vld [vmem:[%s1008_s3 + $0x18] sm:$0xff]  ;;  %v704_v46 = vld [vmem:[%s1008_s3 + $0x60] sm:$0xff]  ;;  %v694_v47 = vld [vmem:[%s1008_s3 + $0x10] sm:$0xff] }
  0x1b   :  { %v703_v48 = vld [vmem:[%s1008_s3 + $0x58] sm:$0xff]  ;;  %v693_v49 = vld [vmem:[%s1008_s3 + $0x8] sm:$0xff]  ;;  %v702_v50 = vld [vmem:[%s1008_s3 + $0x50] sm:$0xff] }
  0x1c   :  { %236 = vmatpush.bf16.msra.mxu0 %v477_v16  ;;  %v692_v51 = vld [vmem:[%s1008_s3] sm:$0xff]  ;;  %v701_v52 = vld [vmem:[%s1008_s3 + $0x48] sm:$0xff] }
  0x1d   :  { %250 = vmatpush.bf16.msra.mxu1 %v541_v17  ;;  %264 = vmatpush.bf16.msra.mxu2 %v481_v18  ;;  %v700_v53 = vld [vmem:[%s1008_s3 + $0x40] sm:$0xff]  ;;  %v55_v58 = vld [vmem:[%s1010_s1 + $0x8] sm:$0xff] }
  0x1e   :  { %278 = vmatpush.bf16.msra.mxu3 %v545_v22  ;;  %v54_v54 = vld [vmem:[%s1010_s1] sm:$0xff]  ;;  %v58_v60 = vunpack.c.l.bf16 %v55_v58  ;;  %v59_v6 = vunpack.c.h.bf16 %v55_v58 }
  0x1f   :  { %v56_v56 = vunpack.c.l.bf16 %v54_v54  ;;  %v57_v62 = vunpack.c.h.bf16 %v54_v54  ;;  %v708_v19 = vld [vmem:[%s1009_s4] ss:$0 sm:$0xff] }
  0x20   :  { %237 = vmatpush.bf16.msra.mxu0 %v469_v28 }
  0x21   :  { %251 = vmatpush.bf16.msra.mxu1 %v533_v31  ;;  %265 = vmatpush.bf16.msra.mxu2 %v473_v32 }
  0x22   :  { %279 = vmatpush.bf16.msra.mxu3 %v537_v35 }
  0x23   :  { %238 = vmatmul.bf16.vlgmr.msra.gmra.mxu0 %v461_v37 }
  0x24   :  { %424 = vmatpush.bf16.msrb.mxu0 %v699_v36  ;;  %252 = vmatmul.bf16.vlgmr.msra.gmra.mxu1 %v465_v39 }
  0x25   :  { %438 = vmatpush.bf16.msrb.mxu1 %v707_v38  ;;  %266 = vmatmul.bf16.vlgmr.msra.gmra.mxu2 %v461_v37 }
  0x26   :  { %280 = vmatmul.bf16.vlgmr.msra.gmra.mxu3 %v465_v39 }
  0x28   :  { %425 = vmatpush.bf16.msrb.mxu0 %v698_v40 }
  0x29   :  { %439 = vmatpush.bf16.msrb.mxu1 %v706_v41 }
  0x2c   :  { %426 = vmatpush.bf16.msrb.mxu0 %v697_v42 }
  0x2d   :  { %440 = vmatpush.bf16.msrb.mxu1 %v705_v44 }
  0x30   :  { %427 = vmatpush.bf16.msrb.mxu0 %v696_v43 }
  0x31   :  { %441 = vmatpush.bf16.msrb.mxu1 %v704_v46 }
  0x34   :  { %428 = vmatpush.bf16.msrb.mxu0 %v695_v45 }
  0x35   :  { %442 = vmatpush.bf16.msrb.mxu1 %v703_v48 }
  0x38   :  { %429 = vmatpush.bf16.msrb.mxu0 %v694_v47 }
  0x39   :  { %443 = vmatpush.bf16.msrb.mxu1 %v702_v50 }
  0x3c   :  { %430 = vmatpush.bf16.msrb.mxu0 %v693_v49 }
  0x3d   :  { %444 = vmatpush.bf16.msrb.mxu1 %v701_v52 }
  0x40   :  { %431 = vmatpush.bf16.msrb.mxu0 %v692_v51 }
  0x41   :  { %445 = vmatpush.bf16.msrb.mxu1 %v700_v53 }
  0xa0   :  { %v239_v55 = vpop.f32.mrf.mxu0 }
  0xa1   :  { %v253_v57 = vpop.f32.mrf.mxu1  ;;  %v240_v59 = vadd.f32 %v239_v55, %v56_v56 }
  0xa3   :  { %v254_v1 = vadd.f32 %v253_v57, %v240_v59 }
  0xa5   :  { %v286_v7 = vmax.f32 %v254_v1, 0.0 }
  0xa8   :  { %v267_v61 = vpop.f32.mrf.mxu2  ;;  %v241_v0 = vpop.f32.mrf.mxu0 }
  0xa9   :  { %v281_v63 = vpop.f32.mrf.mxu3  ;;  %v242_v2 = vadd.f32 %v241_v0, %v58_v60  ;;  %v255_v3 = vpop.f32.mrf.mxu1  ;;  %v268_v5 = vadd.f32 %v267_v61, %v57_v62 }
  0xab   :  { %v256_v4 = vadd.f32 %v255_v3, %v242_v2  ;;  %v282_v11 = vadd.f32 %v281_v63, %v268_v5 }
  0xad   :  { %v288_v8 = vmax.f32 %v256_v4, 0.0  ;;  %v287_v15 = vmax.f32 %v282_v11, 0.0 }
  0xaf   :  { %v290_v9 = vpack.c.bf16 %v288_v8, %v286_v7 }
  0xb0   :  { %v269_v10 = vpop.f32.mrf.mxu2 }
  0xb1   :  { %v270_v12 = vadd.f32 %v269_v10, %v59_v6  ;;  %v283_v13 = vpop.f32.mrf.mxu3  ;;  %432 = vmatmul.bf16.vlgmr.msrb.gmra.mxu0 %v290_v9 }
  0xb3   :  { %v284_v14 = vadd.f32 %v283_v13, %v270_v12 }
  0xb5   :  { %v289_v16 = vmax.f32 %v284_v14, 0.0 }
  0xb7   :  { %v291_v17 = vpack.c.bf16 %v289_v16, %v287_v15 }
  0xb9   :  { %446 = vmatmul.bf16.vlgmr.msrb.gmra.mxu1 %v291_v17 }
 0x12e   :  { %v433_v18 = vpop.f32.mrf.mxu0 }
 0x12f   :  { %v434_v20 = vadd.f32 %v708_v19, %v433_v18 }
 0x136   :  { %v447_v21 = vpop.f32.mrf.mxu1  ;;  %v435_v23 = vpop.f32.mrf.mxu0 }
 0x137   :  { %v448_v22 = vadd.f32 %v447_v21, %v434_v20  ;;  %v436_v24 = vadd.f32 %v708_v19, %v435_v23 }
 0x139   :  { %452 = vst [vmem:[%s1011_s5] sm:$0xff] %v448_v22 }
 0x13e   :  { %v449_v25 = vpop.f32.mrf.mxu1 }
 0x13f   :  { %v450_v26 = vadd.f32 %v449_v25, %v436_v24 }
 0x141   :  { %453 = vst [vmem:[%s1011_s5 + $0x8] sm:$0xff] %v450_v26 }

</bundles_post_ra>
